<compile_context>
chip_gen: v6e
topology: v6e:2x2x1
jax: 0.10.0
libtpu: 0.0.40
codegen_flags: <defaults>
</compile_context>

<pallas_src>
import functools
import math

import jax
import jax.numpy as jnp
from jax.experimental import pallas as pl
from jax.experimental.pallas import tpu as pltpu

F32 = jnp.float32
BF16 = jnp.bfloat16

TRAIN_IDENTITY_NUM = 128                   # cfg.train_identity_num is not defined in the source snippet
ATTR_SPLIT = [9, 10, 5, 2, 9, 3, 2]        # FeatureClassfierModifyV3 (Resnet18 path)
H1, H2 = 2048, 512                         # subnetwork hidden sizes
INPUT_DIM = 512                            # Resnet18 feature dim
VMEM_LIMIT = 48 * 1024 * 1024              # safe on v5e/v6e (128 MiB phys) and v7x (64 MiB phys/TC)


def _round_up(x, m):
    return -(-x // m) * m


def _pick_tile(dim, cap, unit):
    """Largest tile <= cap (multiple of unit) dividing dim; raise if impossible."""
    if dim <= cap:
        return dim
    if dim % unit != 0:
        raise ValueError(f"dim {dim} is not a multiple of {unit}; pad it before tiling")
    t = (cap // unit) * unit
    while t > unit and dim % t != 0:
        t -= unit
    if dim % t != 0:
        raise ValueError(f"no tile <= {cap} (multiple of {unit}) divides {dim}")
    return t


# --------------------------------------------------------------------------------------
# Fused matmul kernel (shared by all layers).
#   fold_in:  relu(x) * in_scale + in_shift happens BEFORE the matmul
#             (folds ReLU -> BatchNorm1d -> Linear).  When fold_in=False the (already bf16)
#             activations are fed straight to the MXU (conv path, L1, merged Li1/Lc1).
#   epilogue: (+bias) * out_scale + out_shift (+ residual) -> out_act at the last K step
#             (folds Conv -> BatchNorm2d -> (+identity) -> ReLU, and the final Sigmoid).
# The output tile is resident across the reduction axis (its block index is constant over k),
# so we accumulate directly into o_ref (f32) - no scratch accumulator.  single_k grids skip
# the accumulate path entirely.
# --------------------------------------------------------------------------------------
def _fused_mm_kernel(*refs, in_act, out_act, fold_in, has_res, k_axis, single_k):
    it = iter(refs)
    x_ref = next(it)
    w_ref = next(it)
    b_ref = next(it)
    ins_ref = next(it) if fold_in else None
    inh_ref = next(it) if fold_in else None
    outs_ref = next(it)
    outh_ref = next(it)
    res_ref = next(it) if has_res else None
    o_ref = next(it)

    w = w_ref[0] if len(w_ref.shape) == 3 else w_ref[...]   # 3-D only for head-batched calls

    if fold_in:
        # Pre-matmul fold in f32 on the VPU (v5e has no bf16 VALU), cast to bf16 for the MXU.
        x = x_ref[...].astype(jnp.float32)
        if in_act == "relu":
            x = jnp.maximum(x, 0.0)
        x = (x * ins_ref[...] + inh_ref[...]).astype(w.dtype)
    else:
        x = x_ref[...]
        if in_act == "relu":
            x = jnp.maximum(x, 0.0)
        x = x.astype(w.dtype)

    part = jnp.dot(x, w, preferred_element_type=jnp.float32)

    def _epilogue(acc):
        y = (acc + b_ref[...]) * outs_ref[...] + outh_ref[...]
        if has_res:
            y = y + res_ref[...]
        if out_act == "relu":
            y = jnp.maximum(y, 0.0)
        elif out_act == "sigmoid":
            y = jax.nn.sigmoid(y)
        return y

    if single_k:
        o_ref[...] = _epilogue(part)
    else:
        k = pl.program_id(k_axis)

        @pl.when(k == 0)
        def _init():
            o_ref[...] = part                 # first partial product, no zeros write

        @pl.when(k > 0)
        def _accum():
            o_ref[...] = o_ref[...] + part

        @pl.when(k == pl.num_programs(k_axis) - 1)
        def _finalize():
            o_ref[...] = _epilogue(o_ref[...])


def fused_linear(x, layer, *, in_act="none", out_act="none", residual=None,
                 tm_cap=256, tk_cap=2048, tn_cap=2048):
    """x:(M,K) @ packed layer (bf16 weight pre-padded to Kp) -> (Mp,Np) f32 (rows padded to mult of 8)."""
    M, K = x.shape
    Kp, N = layer["Kp"], layer["N"]
    Mp = _round_up(M, 8)
    if (Mp, Kp) != (M, K):
        x = jnp.pad(x, ((0, Mp - M), (0, Kp - K)))
    tm = _pick_tile(Mp, tm_cap, 8)
    tk = _pick_tile(Kp, tk_cap, 128)
    tn = _pick_tile(N, tn_cap, 128)
    grid = (Mp // tm, N // tn, Kp // tk)
    single_k = grid[2] == 1
    fold_in = (in_act != "none") or layer.get("has_in_fold", False)
    has_res = residual is not None

    in_specs = [
        pl.BlockSpec((tm, tk), lambda i, j, k: (i, k)),        # x
        pl.BlockSpec((tk, tn), lambda i, j, k: (k, j)),        # W (bf16)
        pl.BlockSpec((1, tn), lambda i, j, k: (0, j)),         # bias
    ]
    args = [x, layer["w"], layer["b"]]
    if fold_in:
        in_specs += [pl.BlockSpec((1, tk), lambda i, j, k: (0, k)),   # in_scale
                     pl.BlockSpec((1, tk), lambda i, j, k: (0, k))]   # in_shift
        args += [layer["ins"], layer["inh"]]
    in_specs += [pl.BlockSpec((1, tn), lambda i, j, k: (0, j)),       # out_scale
                 pl.BlockSpec((1, tn), lambda i, j, k: (0, j))]       # out_shift
    args += [layer["outs"], layer["outh"]]
    if has_res:
        r = residual.astype(F32)
        if r.shape != (Mp, N):
            r = jnp.pad(r, ((0, Mp - r.shape[0]), (0, N - r.shape[1])))
        in_specs.append(pl.BlockSpec((tm, tn), lambda i, j, k: (i, j)))   # residual mirrors out_specs
        args.append(r)

    kernel = functools.partial(_fused_mm_kernel, in_act=in_act, out_act=out_act,
                               fold_in=fold_in, has_res=has_res, k_axis=2, single_k=single_k)
    out = pl.pallas_call(
        kernel,
        out_shape=jax.ShapeDtypeStruct((Mp, N), F32),
        grid_spec=pltpu.PrefetchScalarGridSpec(
            num_scalar_prefetch=0, grid=grid,
            in_specs=in_specs,
            out_specs=pl.BlockSpec((tm, tn), lambda i, j, k: (i, j))),
        compiler_params=pltpu.CompilerParams(
            dimension_semantics=("parallel", "parallel", "arbitrary"),
            vmem_limit_bytes=VMEM_LIMIT),
    )(*args)
    return out                                   # (Mp, N); caller slices rows / columns when needed


def fused_multihead_linear(x, layer, *, in_act="none", out_act="none", tk_cap=2048):
    """H per-head Linear(Kh->Nh) layers (+folded ReLU/BN) in ONE pallas_call.
    x:(Mp, H*Kh) head-major columns; layer["w"]:(H,Kh,Nh) bf16 -> out (Mp, H*Nh) head-major."""
    nheads, Kh, Nh = layer["w"].shape
    Mp = x.shape[0]
    tk = _pick_tile(Kh, tk_cap, 128)
    kph = Kh // tk
    single_k = kph == 1
    grid = (nheads, kph)

    in_specs = [
        pl.BlockSpec((Mp, tk), lambda h, k: (0, h * kph + k)),    # x, head-major column blocks
        pl.BlockSpec((1, tk, Nh), lambda h, k: (h, k, 0)),        # stacked per-head W (bf16)
        pl.BlockSpec((1, Nh), lambda h, k: (0, h)),               # bias
        pl.BlockSpec((1, tk), lambda h, k: (0, h * kph + k)),     # in_scale
        pl.BlockSpec((1, tk), lambda h, k: (0, h * kph + k)),     # in_shift
        pl.BlockSpec((1, Nh), lambda h, k: (0, h)),               # out_scale
        pl.BlockSpec((1, Nh), lambda h, k: (0, h)),               # out_shift
    ]
    kernel = functools.partial(_fused_mm_kernel, in_act=in_act, out_act=out_act,
                               fold_in=True, has_res=False, k_axis=1, single_k=single_k)
    out = pl.pallas_call(
        kernel,
        out_shape=jax.ShapeDtypeStruct((Mp, nheads * Nh), F32),
        grid_spec=pltpu.PrefetchScalarGridSpec(
            num_scalar_prefetch=0, grid=grid,
            in_specs=in_specs,
            out_specs=pl.BlockSpec((Mp, Nh), lambda h, k: (0, h))),
        compiler_params=pltpu.CompilerParams(
            dimension_semantics=("parallel", "arbitrary"),
            vmem_limit_bytes=VMEM_LIMIT),
    )(x, layer["w"], layer["b"], layer["ins"], layer["inh"],
      layer["outs"], layer["outh"])
    return out


# --------------------------------------------------------------------------------------
# Conv = bf16 im2col (plain-JAX glue) + fused Pallas matmul (+ folded BN, + residual, + ReLU)
# --------------------------------------------------------------------------------------
def _im2col_bf16(x, kh, kw, stride, pad):
    # x: (B, H, W, C) -> bf16 patches (B*Ho*Wo, kh*kw*C), column order (dy, dx, c)
    # TODO(synk): im2col patch extraction stays in plain JAX/XLA; folding it into the Pallas grid
    # via index_map/manual DMA would remove the kh*kw activation HBM inflation.
    B, H, W, C = x.shape
    xp = jnp.pad(x.astype(BF16), ((0, 0), (pad, pad), (pad, pad), (0, 0)))
    Ho = (H + 2 * pad - kh) // stride + 1
    Wo = (W + 2 * pad - kw) // stride + 1
    cols = []
    for dy in range(kh):
        for dx in range(kw):
            cols.append(xp[:, dy:dy + stride * Ho:stride, dx:dx + stride * Wo:stride, :])
    patches = jnp.concatenate(cols, axis=-1).reshape(B * Ho * Wo, kh * kw * C)
    return patches, Ho, Wo


def conv_bn(x_nhwc, layer, *, stride, pad, relu=True, residual_nhwc=None):
    """Conv2d(bias=False) + BatchNorm2d(eval) [+ residual add] [+ ReLU], all in one kernel."""
    B = x_nhwc.shape[0]
    patches, Ho, Wo = _im2col_bf16(x_nhwc, layer["kh"], layer["kw"], stride, pad)
    res2d = None
    if residual_nhwc is not None:
        res2d = residual_nhwc.reshape(B * Ho * Wo, layer["N"])
    out = fused_linear(patches, layer,
                       out_act="relu" if relu else "none",
                       residual=res2d)
    return out[:B * Ho * Wo].reshape(B, Ho, Wo, layer["N"])


# --------------------------------------------------------------------------------------
# Deterministic synthetic parameters, pre-packed for the kernels.
# --------------------------------------------------------------------------------------
_key_state = [jax.random.PRNGKey(0)]


def _next_key():
    _key_state[0], k = jax.random.split(_key_state[0])
    return k


def randn(shape, scale=1.0):
    return (scale * jax.random.normal(_next_key(), shape, F32)).astype(F32)


def make_bn(c):
    gamma = 1.0 + 0.05 * randn((c,))
    beta = 0.05 * randn((c,))
    mean = 0.05 * randn((c,))
    var = 1.0 + 0.05 * jnp.abs(randn((c,)))
    scale = gamma / jnp.sqrt(var + 1e-5)
    shift = beta - mean * scale
    return scale, shift


def pack_linear(W, b=None, in_scale=None, in_shift=None, out_scale=None, out_shift=None,
                n_pad_to=None):
    """Pre-pad K to a multiple of 128 (optionally N too), pre-cast to bf16, pre-reshape rows."""
    K, N = W.shape
    Kp = _round_up(K, 128)
    Np = N if n_pad_to is None else _round_up(N, n_pad_to)
    w = jnp.pad(W.astype(F32), ((0, Kp - K), (0, Np - N))).astype(BF16)

    def _rown(v, default):
        v = jnp.full((N,), default, F32) if v is None else v.astype(F32)
        return jnp.pad(v, (0, Np - N)).reshape(1, Np)

    def _rowk(v, default):
        v = jnp.full((K,), default, F32) if v is None else v.astype(F32)
        return jnp.pad(v, (0, Kp - K)).reshape(1, Kp)

    return {"w": w, "Kp": Kp, "N": Np, "N_true": N,
            "b": _rown(b, 0.0),
            "ins": _rowk(in_scale, 1.0), "inh": _rowk(in_shift, 0.0),
            "outs": _rown(out_scale, 1.0), "outh": _rown(out_shift, 0.0),
            "has_in_fold": (in_scale is not None) or (in_shift is not None)}


def pack_conv(w_oihw, bn_scale, bn_shift):
    cout, cin, kh, kw = w_oihw.shape
    wm = jnp.transpose(w_oihw, (2, 3, 1, 0)).reshape(kh * kw * cin, cout)   # (dy,dx,c) row order
    d = pack_linear(wm, out_scale=bn_scale, out_shift=bn_shift)
    d["kh"], d["kw"] = kh, kw
    return d


def pack_heads(W_list, b_list, s_list, h_list):
    nheads, nh = len(W_list), W_list[0].shape[1]
    return {"w": jnp.stack(W_list).astype(BF16),                               # (H, Kh, Nh)
            "b": jnp.concatenate(b_list).reshape(1, -1).astype(F32),
            "ins": jnp.concatenate(s_list).reshape(1, -1).astype(F32),
            "inh": jnp.concatenate(h_list).reshape(1, -1).astype(F32),
            "outs": jnp.ones((1, nheads * nh), F32),
            "outh": jnp.zeros((1, nheads * nh), F32)}


def make_convbn(cin, cout, k):
    w = randn((cout, cin, k, k), math.sqrt(2.0 / (cin * k * k)))
    s, h = make_bn(cout)
    return pack_conv(w, s, h)


def make_block(cin, cout, stride):
    return {"stride": stride,
            "conv1": make_convbn(cin, cout, 3),
            "conv2": make_convbn(cout, cout, 3),
            "down": make_convbn(cin, cout, 1) if (stride != 1 or cin != cout) else None}


def make_resnet18_params():
    p = {"conv1": make_convbn(3, 64, 7)}
    cfgs = [(64, 64, 1), (64, 128, 2), (128, 256, 2), (256, 512, 2)]
    for li, (cin, cout, stride) in enumerate(cfgs, start=1):
        p["layer%d" % li] = [make_block(cin, cout, stride), make_block(cout, cout, 1)]
    return p


def make_classifier_params(input_dim=INPUT_DIM, id_num=TRAIN_IDENTITY_NUM):
    W1s, b1s, s1s, h1s = [], [], [], []
    W2as, b2as, s2s, h2s = [], [], [], []
    W2bs, b2bs = [], []
    for n in ATTR_SPLIT:
        W1s.append(randn((input_dim, H1), 1.0 / math.sqrt(input_dim)))
        b1s.append(randn((H1,), 0.01))
        s1, h1 = make_bn(H1); s1s.append(s1); h1s.append(h1)
        W2as.append(randn((H1, H2), 1.0 / math.sqrt(H1)))
        b2as.append(randn((H2,), 0.01))
        s2, h2 = make_bn(H2); s2s.append(s2); h2s.append(h2)
        W2bs.append(randn((H2, n), 1.0 / math.sqrt(H2)))
        b2bs.append(randn((n,), 0.01))

    # subnetwork1_*: seven Linear(512,2048) fused into one (512,14336) matmul -> output IS global_feature
    L1 = pack_linear(jnp.concatenate(W1s, axis=1), jnp.concatenate(b1s))
    # subnetwork2_* first Linear: head-batched (7,2048,512) with ReLU->BN(2048) folded in front
    L2a = pack_heads(W2as, b2as, s1s, h1s)
    # subnetwork2_* second Linear: 7 heads fused into one block-diagonal (3584, 40) matmul (+sigmoid),
    # output padded to 128 lanes for unmasked stores.
    total_n = sum(ATTR_SPLIT)
    rows, off = [], 0
    for w2b, n in zip(W2bs, ATTR_SPLIT):
        rows.append(jnp.pad(w2b, ((0, 0), (off, total_n - off - n))))
        off += n
    L2b = pack_linear(jnp.concatenate(rows, axis=0), jnp.concatenate(b2bs),
                      in_scale=jnp.concatenate(s2s), in_shift=jnp.concatenate(h2s),
                      n_pad_to=128)

    gfd = H1 * len(ATTR_SPLIT)
    si1, hi1 = make_bn(4096)     # identity_network BN(4096)
    si2, hi2 = make_bn(2048)     # identity_network BN(2048)
    sc1, hc1 = make_bn(4096)     # global_contrastive_network BN(4096)

    # identity_network Linear(14336,4096) + global_contrastive Linear(14336,4096) merged along N.
    Wi1 = randn((gfd, 4096), 1.0 / math.sqrt(gfd)); bi1 = randn((4096,), 0.01)
    Wc1 = randn((gfd, 4096), 1.0 / math.sqrt(gfd)); bc1 = randn((4096,), 0.01)
    Lic1 = pack_linear(jnp.concatenate([Wi1, Wc1], axis=1), jnp.concatenate([bi1, bc1]))

    # Their second Linears (4096->2048) merged as a 2-head batched matmul with per-head BN(4096) fold.
    Wi2 = randn((4096, 2048), 1.0 / math.sqrt(4096)); bi2 = randn((2048,), 0.01)
    Wc2 = randn((4096, 2048), 1.0 / math.sqrt(4096)); bc2 = randn((2048,), 0.01)
    Lic2 = pack_heads([Wi2, Wc2], [bi2, bc2], [si1, sc1], [hi1, hc1])

    Li3 = pack_linear(randn((2048, id_num), 1.0 / math.sqrt(2048)), randn((id_num,), 0.01),
                      in_scale=si2, in_shift=hi2)
    # TODO(synk): optional int8 (v5e/v6e) or fp8 (v7x) weight packing for Lic1/Lic2 would halve the
    # dominant HBM weight stream; kept in bf16 here for portability.
    return {"L1": L1, "L2a": L2a, "L2b": L2b,
            "Lic1": Lic1, "Lic2": Lic2, "Li3": Li3}


# --------------------------------------------------------------------------------------
# Forward passes
# --------------------------------------------------------------------------------------
def basic_block(x, p):
    out1 = conv_bn(x, p["conv1"], stride=p["stride"], pad=1, relu=True)
    if p["down"] is not None:
        identity = conv_bn(x, p["down"], stride=p["stride"], pad=0, relu=False)
    else:
        identity = x
    # conv2 + BN + residual-add + ReLU fused into a single kernel epilogue.
    return conv_bn(out1, p["conv2"], stride=1, pad=1, relu=True, residual_nhwc=identity)


def resnet18_features(img_nchw, p):
    x = jnp.transpose(img_nchw, (0, 2, 3, 1)).astype(F32)      # NCHW -> NHWC
    x = conv_bn(x, p["conv1"], stride=2, pad=3, relu=True)
    # TODO(synk): 3x3/s2 max-pool window reduction left to XLA reduce_window (not Pallas).
    x = jax.lax.reduce_window(x, -jnp.inf, jax.lax.max,
                              (1, 3, 3, 1), (1, 2, 2, 1),
                              ((0, 0), (1, 1), (1, 1), (0, 0)))
    for li in range(1, 5):
        for blk in p["layer%d" % li]:
            x = basic_block(x, blk)
    return jnp.mean(x, axis=(1, 2))                            # AdaptiveAvgPool2d((1,1)) + flatten


def classifier_forward(feat, p):
    B = feat.shape[0]
    Mp = _round_up(B, 8)
    x = jnp.pad(feat, ((0, Mp - B), (0, 0)))                   # pad the batch once for the whole head

    gf = fused_linear(x, p["L1"])                               # (Mp, 14336) == global_feature
    h = fused_multihead_linear(gf, p["L2a"], in_act="relu")     # (Mp, 3584), head-major
    res = fused_linear(h, p["L2b"], in_act="relu",
                       out_act="sigmoid")[:B, :p["L2b"]["N_true"]]          # (B, 40)

    # identity + global-contrastive branches share gf; their first/second Linears are merged.
    ic1 = fused_linear(gf, p["Lic1"])                           # (Mp, 8192) = [a1 | c1]
    ic2 = fused_multihead_linear(ic1, p["Lic2"], in_act="relu") # (Mp, 4096) = [a2 | gcf]
    a2 = ic2[:, :2048]
    gcf = ic2[:B, 2048:]
    identity_scores = fused_linear(a2, p["Li3"], in_act="relu")[:B]
    return res, identity_scores, gcf


def face_attr_model_modify_forward(image_nchw, params):
    features = resnet18_features(image_nchw, params["resnet"])
    return classifier_forward(features, params["clf"])


# --------------------------------------------------------------------------------------
if __name__ == "__main__":
    B = 2
    params = {"resnet": make_resnet18_params(), "clf": make_classifier_params()}
    image = jax.random.normal(jax.random.PRNGKey(0), (B, 3, 32, 32), F32)     # NCHW input

    res, identity_scores, global_contrastive = face_attr_model_modify_forward(image, params)
    jax.block_until_ready((res, identity_scores, global_contrastive))

    assert res.shape == (B, sum(ATTR_SPLIT))
    assert identity_scores.shape == (B, TRAIN_IDENTITY_NUM)
    assert global_contrastive.shape == (B, 2048)
    assert bool(jnp.all(jnp.isfinite(res)))
    assert bool(jnp.all(jnp.isfinite(identity_scores)))
    assert bool(jnp.all(jnp.isfinite(global_contrastive)))
    print("KERNEL_OK")
</pallas_src>

<mosaic_0001>
module attributes {stable_mosaic.version = 11 : i64} {
  func.func @_fused_mm_kernel(%arg0: i32, %arg1: i32, %arg2: i32, %arg3: memref<256x256xbf16, #tpu.memory_space<vmem>>, %arg4: memref<256x64xbf16, #tpu.memory_space<vmem>>, %arg5: memref<1x64xf32, #tpu.memory_space<vmem>>, %arg6: memref<1x64xf32, #tpu.memory_space<vmem>>, %arg7: memref<1x64xf32, #tpu.memory_space<vmem>>, %arg8: memref<256x64xf32, #tpu.memory_space<vmem>>) attributes {dimension_semantics = [#tpu.dimension_semantics<parallel>, #tpu.dimension_semantics<parallel>, #tpu.dimension_semantics<arbitrary>], iteration_bounds = array<i64: 2, 1, 1>, scalar_prefetch = 0 : i64, scratch_operands = 0 : i64, tpu.core_type = #tpu.core_type<tc>, window_params = [{transform_indices = @transform_0, window_bounds = array<i64: 256, 256>}, {transform_indices = @transform_1, window_bounds = array<i64: 256, 64>}, {transform_indices = @transform_2, window_bounds = array<i64: 1, 64>}, {transform_indices = @transform_3, window_bounds = array<i64: 1, 64>}, {transform_indices = @transform_4, window_bounds = array<i64: 1, 64>}, {transform_indices = @transform_5, window_bounds = array<i64: 256, 64>}]} {
    %c0 = arith.constant 0 : index
    %c0_0 = arith.constant 0 : index
    %0 = vector.load %arg4[%c0, %c0_0] : memref<256x64xbf16, #tpu.memory_space<vmem>>, vector<256x64xbf16>
    %c0_1 = arith.constant 0 : index
    %c0_2 = arith.constant 0 : index
    %1 = vector.load %arg3[%c0_1, %c0_2] : memref<256x256xbf16, #tpu.memory_space<vmem>>, vector<256x256xbf16>
    %cst = arith.constant dense<0.000000e+00> : vector<256x64xf32>
    %2 = tpu.matmul %1, %0, %cst {dimension_numbers = #tpu.dot_dimension_numbers<[1], [0], [0], [1], [0, 0, 1, 1], [], []>} : vector<256x256xbf16>, vector<256x64xbf16>, vector<256x64xf32> -> vector<256x64xf32>
    %c0_3 = arith.constant 0 : index
    %c0_4 = arith.constant 0 : index
    %3 = vector.load %arg5[%c0_3, %c0_4] : memref<1x64xf32, #tpu.memory_space<vmem>>, vector<1x64xf32>
    %4 = vector.broadcast %3 : vector<1x64xf32> to vector<256x64xf32>
    %5 = arith.addf %2, %4 : vector<256x64xf32>
    %c0_5 = arith.constant 0 : index
    %c0_6 = arith.constant 0 : index
    %6 = vector.load %arg6[%c0_5, %c0_6] : memref<1x64xf32, #tpu.memory_space<vmem>>, vector<1x64xf32>
    %7 = vector.broadcast %6 : vector<1x64xf32> to vector<256x64xf32>
    %8 = arith.mulf %5, %7 : vector<256x64xf32>
    %c0_7 = arith.constant 0 : index
    %c0_8 = arith.constant 0 : index
    %9 = vector.load %arg7[%c0_7, %c0_8] : memref<1x64xf32, #tpu.memory_space<vmem>>, vector<1x64xf32>
    %10 = vector.broadcast %9 : vector<1x64xf32> to vector<256x64xf32>
    %11 = arith.addf %8, %10 : vector<256x64xf32>
    %cst_9 = arith.constant 0.000000e+00 : f32
    %12 = vector.broadcast %cst_9 : f32 to vector<256x64xf32>
    %13 = arith.maximumf %11, %12 : vector<256x64xf32>
    %c0_10 = arith.constant 0 : index
    %c0_11 = arith.constant 0 : index
    %14 = vector.load %arg8[%c0_10, %c0_11] : memref<256x64xf32, #tpu.memory_space<vmem>>, vector<256x64xf32>
    tpu.vector_store %arg8[%c0_10, %c0_11], %13 {strides = array<i32>} : memref<256x64xf32, #tpu.memory_space<vmem>>, vector<256x64xf32>,
    return
  }
  func.func @transform_0(%arg0: i32, %arg1: i32, %arg2: i32) -> (i32, i32) {
    %c0_i32 = arith.constant 0 : i32
    return %arg0, %arg2 : i32, i32
  }
  func.func @transform_1(%arg0: i32, %arg1: i32, %arg2: i32) -> (i32, i32) {
    %c0_i32 = arith.constant 0 : i32
    return %arg2, %arg1 : i32, i32
  }
  func.func @transform_2(%arg0: i32, %arg1: i32, %arg2: i32) -> (i32, i32) {
    %c0_i32 = arith.constant 0 : i32
    %c0_i32_0 = arith.constant 0 : i32
    return %c0_i32, %arg1 : i32, i32
  }
  func.func @transform_3(%arg0: i32, %arg1: i32, %arg2: i32) -> (i32, i32) {
    %c0_i32 = arith.constant 0 : i32
    %c0_i32_0 = arith.constant 0 : i32
    return %c0_i32, %arg1 : i32, i32
  }
  func.func @transform_4(%arg0: i32, %arg1: i32, %arg2: i32) -> (i32, i32) {
    %c0_i32 = arith.constant 0 : i32
    %c0_i32_0 = arith.constant 0 : i32
    return %c0_i32, %arg1 : i32, i32
  }
  func.func @transform_5(%arg0: i32, %arg1: i32, %arg2: i32) -> (i32, i32) {
    %c0_i32 = arith.constant 0 : i32
    return %arg0, %arg1 : i32, i32
  }
}

</mosaic_0001>

<bundles_post_ra>
// kernel: tpu_custom_call.1
= control target key start
LH: loop header
LB: loop body
LE: loop exit
PB: predicated region body
PF: predicated region fallthrough
CT: control target
= control target key end

     0   :  { %10 = vsyncpa [#allocation3], 0  ;;  %s1920_s0 = inlined_call_operand.hbm [shape: bf16[512,256], index: 0, kind: input, shape index: {}]   ;;  %s1921_s1 = inlined_call_operand.vmem [shape: bf16[256,64], index: 1, kind: input, shape index: {}]   ;;  %s1922_s2 = inlined_call_operand.vmem [shape: f32[1,64], index: 2, kind: input, shape index: {}]   ;;  %s1923_s3 = inlined_call_operand.vmem [shape: f32[1,64], index: 3, kind: input, shape index: {}]   ;;  %s1924_s4 = inlined_call_operand.vmem [shape: f32[1,64], index: 4, kind: input, shape index: {}]   ;;  %s1925_s5 = inlined_call_operand.vmem [shape: f32[512,64], index: 5, kind: output, shape index: {}]  }
   0x1   :  { %12 = vsyncpa [#allocation3 + $0x1], 0  ;;  %s1566_s18 = smov 0   ;;  %s1568_s19 = smov 0  }
   0x2   :  { %s1570_s20 = smov 0   ;;  %s1572_s21 = smov 0  }
   0x3   :  { %s1574_s22 = smov 0   ;;  %s1576_s23 = smov 0  }
   0x4 LB: > { %s1133_s24 = sadd.s32 4294967295, %s1531_s23   ;;  %s37_s25 = sadd.s32 1, %s1527_s22  ;;  %s1531_s23 = sphi %s1576_s23, %s18_s23   ;;  %s1527_s22 = sphi %s1574_s22, %s1933_s22   ;;  %s1523_s21 = sphi %s1572_s21, %s1932_s21   ;;  %s1519_s20 = sphi %s1570_s20, %s1931_s20   ;;  %s1515_s19 = sphi %s1568_s19, %s1930_s19   ;;  %s1511_s18 = sphi %s1566_s18, %s1929_s18  }
   0x5   : > { %p39_p0 = scmp.ge.s32.totalorder %s37_s25, 2  ;;  %s46_s26 = sadd.s32 1, %s1519_s20 }
   0x6   : > { %p53_p1 = scmp.ne.s32.totalorder %s1519_s20, %s1515_s19  ;;  %p54_p2 = scmp.eq.s32.totalorder %s1531_s23, 0 }
   0x7   : > { %s1935_s25 = smov (%p39_p0, %s37_s25), 0  ;;  %p59_p4 = scmp.ne.s32.totalorder %s1515_s19, %s1511_s18 }
   0x8   : > { %p1602_p3 = por %p54_p2, %p53_p1  ;;  %s41_s28 = ssub.s32 %s1527_s22, %s1935_s25 }
   0x9   : > { %p60_p5 = scmp.eq.s32.totalorder %s1133_s24, 0  ;;  %p44_p6 = scmp.eq.s32.totalorder %s41_s28, 0 }
   0xa   : > { %p1338_p8 = scmp.lt.s32.totalorder %s1531_s23, 2  ;;  %s247_s6 = sand.u32 1, %s1519_s20  }
   0xb   : > { %p1609_p7 = por %p60_p5, %p59_p4  ;;  %s1203_s7 = sshll.u32 %s1527_s22, 12 }
   0xc   : > { %s1615_s30 = scalar_select %p44_p6, %s1519_s20, %s46_s26  }
   0xd   : > { %s1141_s8 = sshll.u32 %s247_s6, 8  ;;  %s260_s11 = scalar_lea.hbm %s1920_s0, %s1203_s7 }
   0xe   : > { %s251_s12 = scalar_lea.vmem [#allocation2], %s1141_s8  ;;  %p1624_p9 = pnand %p1338_p8, %p1602_p3 }
   0xf   : > { %s261_s13 = sshll.u32 %s251_s12, 4  ;;  %s248_s15 = scalar_lea.sflag [#allocation3], %s247_s6  ;;  %s262_s13 = int_to_ptr.vmem [resolvable:$true] %s261_s13 }
  0x10   : > { %p1455_p10 = pneg %p1624_p9  ;;  %s1466_s16 = scalar_lea.vmem %s262_s13, 4096 }
  0x11   : > { %p1467_p11 = scmp.ne.s32.totalorder %s262_s13, %s1466_s16  ;;  %s1533_s17 = smov [#allocation2]  }
  0x12   : > { %s1471_s18 = sshll.u32 %s1533_s17, 4  ;;  %s1472_s18 = int_to_ptr.vmem [resolvable:$false] %s1471_s18 }
  0x13   : > { %p1469_p12 = pnand %p1467_p11, %p1455_p10  ;;  %s1473_s24 = scalar_lea.vmem %s1472_s18, 8192 }
  0x14   : > { %p1474_p0 = scmp.lt.s32.totalorder %s262_s13, %s1472_s18  ;;  %p1475_p1 = scmp.lt.s32.totalorder %s1473_s24, %s1466_s16 }
  0x15   : > { %p1470_p13 = pneg %p1469_p12 }
  0x16   : > { %p1476_p2 = por %p1475_p1, %p1474_p0 }
  0x18   : > { %p1477_p3 = pnand %p1476_p2, %p1470_p13 }
  0x1a   : > { %1480 = shalt.err (!%p1477_p3)
}
  0x1b   : > { %s1534_s26 = smov 128   ;;  %s1535_s27 = smov 8  }
  0x1c   : > { %1337 = dma.hbm_to_vmem [thread:$0]  (!%p1624_p9), %s260_s11, 4096, %s262_s13, %s248_s15, %s1534_s26, %s1534_s26, %s1535_s27  }
  0x1d   : > { %p1145_p4 = scmp.ge.s32.totalorder %s1531_s23, 1  ;;  %p269_p5 = scmp.lt.s32.totalorder %s1531_s23, 3 }
  0x1f   : > { %p270_p6 = pnand %p1145_p4, %p269_p5 }
  0x20   : > { %s275_s28 = sand.u32 (!%p270_p6), 1, %s1515_s19  }
  0x21   : > { %273 = sbr.rel (%p270_p6) target bundleno = 338 (0x152), region = 40  ;;  %s1146_s6 = sshll.u32 (!%p270_p6), %s275_s28, 8 }
  0x22   : > { %s276_s7 = scalar_lea.sflag (!%p270_p6), [#allocation3], %s275_s28  ;;  %s1635_s8 = scalar_lea.vmem (!%p270_p6), [#allocation2], %s1146_s6 }
  0x26   : > { %1506 = dma.done.wait (%p1609_p7), %s276_s7, 4096  }
  0x27   : > { %1508 = vsyncadd (%p1609_p7), %s276_s7, 4294963200  ;;  %v1389_v0 = vld [vmem:[%s1921_s1 + $0x78] sm:$0xff]   ;;  %v1391_v2 = vld [vmem:[%s1921_s1 + $0x70] sm:$0xff]   ;;  %s1147_s6 = sshll.u32 %s1523_s21, 5  ;;  %vm954_vm0 = vcmask 523264  }
  0x28   : > { %v1390_v1 = vld [vmem:[%s1921_s1 + $0x38] sm:$0xff]   ;;  %1204 = vmatprep.subr.bf16.mxu0 %v1389_v0  ;;  %1316 = vmatprep.subr.bf16.mxu1 %v1389_v0  ;;  %v1392_v3 = vld [vmem:[%s1921_s1 + $0x30] sm:$0xff]   ;;  %v1393_v4 = vld [vmem:[%s1921_s1 + $0x68] sm:$0xff]   ;;  %p347_p7 = scmp.lt.s32.totalorder %s1147_s6, 63 }
  0x29   : > { %1205 = vmatpush3.bf16.msra.mxu0 %v1390_v1  ;;  %1324 = vmatpush3.bf16.msra.mxu1 %v1390_v1  ;;  %v1394_v5 = vld [vmem:[%s1921_s1 + $0x28] sm:$0xff]   ;;  %v1395_v6 = vld [vmem:[%s1921_s1 + $0x60] sm:$0xff]   ;;  %v1397_v8 = vld [vmem:[%s1921_s1 + $0x58] sm:$0xff]  }
  0x2a   : > { %1206 = vmatprep.subr.bf16.mxu0 %v1391_v2  ;;  %1317 = vmatprep.subr.bf16.mxu1 %v1391_v2  ;;  %v1396_v7 = vld [vmem:[%s1921_s1 + $0x20] sm:$0xff]   ;;  %v1398_v9 = vld [vmem:[%s1921_s1 + $0x18] sm:$0xff]   ;;  %v1399_v10 = vld [vmem:[%s1921_s1 + $0x50] sm:$0xff]   ;;  %s1937_s6 = smov (!%p347_p7, %s1147_s6), 63 }
  0x2b   : > { %v1407_v11 = vld [vmem:[%s1635_s8 + $0x4] ss:$8 sps:$4 sm:$0xff]   ;;  %v1400_v13 = vld [vmem:[%s1921_s1 + $0x10] sm:$0xff]   ;;  %v1405_v18 = vld [vmem:[%s1635_s8] ss:$8 sps:$4 sm:$0xff]   ;;  %s1148_s12 = sshll.u32 %s1937_s6, 3 }
  0x2c   : > { %v1410_v12 = vld [vmem:[%s1635_s8 + $0x84] ss:$8 sps:$4 sm:$0xff]   ;;  %715 = vmatprep.mubr.bf16.mxu0 %v1407_v11  ;;  %v1408_v19 = vld [vmem:[%s1635_s8 + $0x80] ss:$8 sps:$4 sm:$0xff]   ;;  %v1411_v20 = vld [vmem:[%s1635_s8 + $0x14] ss:$8 sps:$4 sm:$0xff]   ;;  %s1748_s15 = scalar_lea.vmem %s1925_s5, %s1148_s12 }
  0x2d   : > { %1207 = vmatpush3.bf16.msra.mxu0 %v1392_v3  ;;  %1325 = vmatpush3.bf16.msra.mxu1 %v1392_v3  ;;  %v1401_v14 = vld [vmem:[%s1921_s1 + $0x48] sm:$0xff]   ;;  %v1403_v16 = vld [vmem:[%s1921_s1 + $0x40] sm:$0xff]   ;;  %v1413_v21 = vld [vmem:[%s1635_s8 + $0x94] ss:$8 sps:$4 sm:$0xff]  }
  0x2e   : > { %1208 = vmatprep.subr.bf16.mxu0 %v1393_v4  ;;  %1318 = vmatprep.subr.bf16.mxu1 %v1393_v4  ;;  %v1402_v15 = vld [vmem:[%s1921_s1 + $0x8] sm:$0xff]   ;;  %v1404_v17 = vld [vmem:[%s1921_s1] sm:$0xff]   ;;  %v1415_v22 = vld [vmem:[%s1635_s8 + $0x10] ss:$8 sps:$4 sm:$0xff]  }
  0x2f   : > { %779 = vmatprep.mubr.bf16.mxu1 %v1410_v12  ;;  %v1416_v23 = vld [vmem:[%s1635_s8 + $0x90] ss:$8 sps:$4 sm:$0xff]   ;;  %v1417_v24 = vld [vmem:[%s1635_s8 + $0x24] ss:$8 sps:$4 sm:$0xff]   ;;  %v1421_v26 = vld [vmem:[%s1635_s8 + $0x20] ss:$8 sps:$4 sm:$0xff]  }
  0x30   : > { %v1419_v25 = vld [vmem:[%s1635_s8 + $0xa4] ss:$8 sps:$4 sm:$0xff]   ;;  %v1422_v27 = vld [vmem:[%s1635_s8 + $0xa0] ss:$8 sps:$4 sm:$0xff]   ;;  %v1423_v28 = vld [vmem:[%s1635_s8 + $0x34] ss:$8 sps:$4 sm:$0xff]  }
  0x31   : > { %1209 = vmatpush3.bf16.msra.mxu0 %v1394_v5  ;;  %1326 = vmatpush3.bf16.msra.mxu1 %v1394_v5  ;;  %v1425_v29 = vld [vmem:[%s1635_s8 + $0xb4] ss:$8 sps:$4 sm:$0xff]   ;;  %v1427_v30 = vld [vmem:[%s1635_s8 + $0x30] ss:$8 sps:$4 sm:$0xff]   ;;  %v1429_v32 = vld [vmem:[%s1635_s8 + $0x44] ss:$8 sps:$4 sm:$0xff]  }
  0x32   : > { %1210 = vmatprep.subr.bf16.mxu0 %v1395_v6  ;;  %1319 = vmatprep.subr.bf16.mxu1 %v1395_v6  ;;  %v1428_v31 = vld [vmem:[%s1635_s8 + $0xb0] ss:$8 sps:$4 sm:$0xff]   ;;  %v1431_v33 = vld [vmem:[%s1635_s8 + $0xc4] ss:$8 sps:$4 sm:$0xff]   ;;  %v1433_v34 = vld [vmem:[%s1635_s8 + $0x40] ss:$8 sps:$4 sm:$0xff]  }
  0x33   : > { %v1434_v35 = vld [vmem:[%s1635_s8 + $0xc0] ss:$8 sps:$4 sm:$0xff]   ;;  %v1435_v36 = vld [vmem:[%s1635_s8 + $0x54] ss:$8 sps:$4 sm:$0xff]   ;;  %v1439_v38 = vld [vmem:[%s1635_s8 + $0x50] ss:$8 sps:$4 sm:$0xff]  }
  0x34   : > { %v1437_v37 = vld [vmem:[%s1635_s8 + $0xd4] ss:$8 sps:$4 sm:$0xff]   ;;  %v1440_v39 = vld [vmem:[%s1635_s8 + $0xd0] ss:$8 sps:$4 sm:$0xff]   ;;  %v1441_v40 = vld [vmem:[%s1635_s8 + $0x64] ss:$8 sps:$4 sm:$0xff]  }
  0x35   : > { %1211 = vmatpush3.bf16.msra.mxu0 %v1396_v7  ;;  %1327 = vmatpush3.bf16.msra.mxu1 %v1396_v7  ;;  %v1443_v41 = vld [vmem:[%s1635_s8 + $0xe4] ss:$8 sps:$4 sm:$0xff]   ;;  %v1445_v42 = vld [vmem:[%s1635_s8 + $0x60] ss:$8 sps:$4 sm:$0xff]   ;;  %v1447_v44 = vld [vmem:[%s1635_s8 + $0x74] ss:$8 sps:$4 sm:$0xff]  }
  0x36   : > { %1212 = vmatprep.subr.bf16.mxu0 %v1397_v8  ;;  %1320 = vmatprep.subr.bf16.mxu1 %v1397_v8  ;;  %v1446_v43 = vld [vmem:[%s1635_s8 + $0xe0] ss:$8 sps:$4 sm:$0xff]   ;;  %v1449_v45 = vld [vmem:[%s1635_s8 + $0xf4] ss:$8 sps:$4 sm:$0xff]   ;;  %v1451_v46 = vld [vmem:[%s1635_s8 + $0x70] ss:$8 sps:$4 sm:$0xff]  }
  0x37   : > { %v1452_v47 = vld [vmem:[%s1635_s8 + $0xf0] ss:$8 sps:$4 sm:$0xff]   ;;  %v1725_v50 = vld [vmem:[%s1922_s2] ss:$0 sm:$0xff] }
  0x38   : > { %v1730_v55 = vld [vmem:[%s1923_s3] ss:$0 sm:$0xff] }
  0x39   : > { %1213 = vmatpush3.bf16.msra.mxu0 %v1398_v9  ;;  %1328 = vmatpush3.bf16.msra.mxu1 %v1398_v9  ;;  %v1737_v60 = vld [vmem:[%s1924_s4] ss:$0 sm:$0xff] }
  0x3a   : > { %1214 = vmatprep.subr.bf16.mxu0 %v1399_v10  ;;  %1321 = vmatprep.subr.bf16.mxu1 %v1399_v10 }
  0x3d   : > { %1215 = vmatpush3.bf16.msra.mxu0 %v1400_v13  ;;  %1329 = vmatpush3.bf16.msra.mxu1 %v1400_v13 }
  0x3e   : > { %1216 = vmatprep.subr.bf16.mxu0 %v1401_v14  ;;  %1322 = vmatprep.subr.bf16.mxu1 %v1401_v14 }
  0x41   : > { %1217 = vmatpush3.bf16.msra.mxu0 %v1402_v15  ;;  %1330 = vmatpush3.bf16.msra.mxu1 %v1402_v15 }
  0x42   : > { %1218 = vmatprep.subr.bf16.mxu0 %v1403_v16  ;;  %1323 = vmatprep.subr.bf16.mxu1 %v1403_v16 }
  0x45   : > { %1219 = vmatpush3.bf16.msra.mxu0 %v1404_v17  ;;  %1331 = vmatpush3.bf16.msra.mxu1 %v1404_v17 }
  0x48   : > { %716 = vmatmul.mubr.bf16.vlgmr.msra.gmra.mxu0 %v1405_v18  ;;  %780 = vmatmul.mubr.bf16.vlgmr.msra.gmra.mxu1 %v1408_v19 }
  0x49   : > { %723 = vmatprep.mubr.bf16.mxu0 %v1411_v20  ;;  %787 = vmatprep.mubr.bf16.mxu1 %v1413_v21 }
  0x50   : > { %724 = vmatmul.mubr.bf16.gmra.mxu0 %v1415_v22  ;;  %788 = vmatmul.mubr.bf16.gmra.mxu1 %v1416_v23 }
  0x51   : > { %731 = vmatprep.mubr.bf16.mxu0 %v1417_v24  ;;  %795 = vmatprep.mubr.bf16.mxu1 %v1419_v25 }
  0x58   : > { %732 = vmatmul.mubr.bf16.gmra.mxu0 %v1421_v26  ;;  %796 = vmatmul.mubr.bf16.gmra.mxu1 %v1422_v27 }
  0x59   : > { %739 = vmatprep.mubr.bf16.mxu0 %v1423_v28  ;;  %803 = vmatprep.mubr.bf16.mxu1 %v1425_v29 }
  0x60   : > { %740 = vmatmul.mubr.bf16.gmra.mxu0 %v1427_v30  ;;  %804 = vmatmul.mubr.bf16.gmra.mxu1 %v1428_v31 }
  0x61   : > { %747 = vmatprep.mubr.bf16.mxu0 %v1429_v32  ;;  %811 = vmatprep.mubr.bf16.mxu1 %v1431_v33 }
  0x68   : > { %748 = vmatmul.mubr.bf16.gmra.mxu0 %v1433_v34  ;;  %812 = vmatmul.mubr.bf16.gmra.mxu1 %v1434_v35 }
  0x69   : > { %755 = vmatprep.mubr.bf16.mxu0 %v1435_v36  ;;  %819 = vmatprep.mubr.bf16.mxu1 %v1437_v37 }
  0x70   : > { %756 = vmatmul.mubr.bf16.gmra.mxu0 %v1439_v38  ;;  %820 = vmatmul.mubr.bf16.gmra.mxu1 %v1440_v39 }
  0x71   : > { %763 = vmatprep.mubr.bf16.mxu0 %v1441_v40  ;;  %827 = vmatprep.mubr.bf16.mxu1 %v1443_v41 }
  0x78   : > { %764 = vmatmul.mubr.bf16.gmra.mxu0 %v1445_v42  ;;  %828 = vmatmul.mubr.bf16.gmra.mxu1 %v1446_v43 }
  0x79   : > { %771 = vmatprep.mubr.bf16.mxu0 %v1447_v44  ;;  %835 = vmatprep.mubr.bf16.mxu1 %v1449_v45 }
  0x80   : > { %772 = vmatmul.mubr.bf16.gmra.mxu0 %v1451_v46  ;;  %836 = vmatmul.mubr.bf16.gmra.mxu1 %v1452_v47 }
 0x108   : > { %v1220_v48 = vpop.f32.mrf.mxu0  ;;  %v1268_v49 = vpop.f32.mrf.mxu1 }
 0x10a   : > { %v1221_v51 = vpop.f32.mrf.mxu0  ;;  %v1269_v52 = vpop.f32.mrf.mxu1 }
 0x10b   : > { %v1222_v53 = vadd.f32 %v1221_v51, %v1220_v48  ;;  %v1270_v54 = vadd.f32 %v1269_v52, %v1268_v49 }
 0x10c   : > { %v1223_v56 = vpop.f32.mrf.mxu0  ;;  %v1271_v57 = vpop.f32.mrf.mxu1 }
 0x10d   : > { %v718_v58 = vadd.f32 %v1222_v53, %v1725_v50  ;;  %v782_v59 = vadd.f32 %v1270_v54, %v1725_v50 }
 0x10e   : > { %v1224_v61 = vpop.f32.mrf.mxu0  ;;  %v1272_v62 = vpop.f32.mrf.mxu1 }
 0x10f   : > { %v851_v63 = vmul.f32 %v1730_v55, %v718_v58  ;;  %v867_v0 = vmul.f32 %v1730_v55, %v782_v59  ;;  %v1225_v1 = vadd.f32 %v1224_v61, %v1223_v56  ;;  %v1273_v2 = vadd.f32 %v1272_v62, %v1271_v57 }
 0x110   : > { %v1226_v3 = vpop.f32.mrf.mxu0  ;;  %v1274_v4 = vpop.f32.mrf.mxu1 }
 0x111   : > { %v890_v5 = vadd.f32 %v1737_v60, %v851_v63  ;;  %v906_v6 = vadd.f32 %v1737_v60, %v867_v0  ;;  %v721_v7 = vadd.f32 %v1225_v1, %v1725_v50  ;;  %v785_v8 = vadd.f32 %v1273_v2, %v1725_v50 }
 0x112   : > { %v1227_v9 = vpop.f32.mrf.mxu0  ;;  %v1275_v10 = vpop.f32.mrf.mxu1 }
 0x113   : > { %v922_v11 = vmax.f32 %v890_v5, 0.0  ;;  %v938_v12 = vmax.f32 %v906_v6, 0.0  ;;  %v852_v13 = vmul.f32 %v1730_v55, %v721_v7  ;;  %v868_v14 = vmul.f32 %v1730_v55, %v785_v8 }
 0x114   : > { %v1228_v15 = vadd.f32 %v1227_v9, %v1226_v3  ;;  %v1276_v16 = vadd.f32 %v1275_v10, %v1274_v4  ;;  %v1229_v17 = vpop.f32.mrf.mxu0  ;;  %v1277_v18 = vpop.f32.mrf.mxu1 }
 0x115   : > { %955 = vst.msk [vmem:[%s1748_s15] sm:$0xff] %vm954_vm0, %v922_v11  ;;  %971 = vst.msk [vmem:[%s1748_s15 + $0x80] sm:$0xff] %vm954_vm0, %v938_v12  ;;  %v891_v19 = vadd.f32 %v1737_v60, %v852_v13  ;;  %v907_v20 = vadd.f32 %v1737_v60, %v868_v14 }
 0x116   : > { %v726_v21 = vadd.f32 %v1228_v15, %v1725_v50  ;;  %v790_v22 = vadd.f32 %v1276_v16, %v1725_v50  ;;  %v1230_v23 = vpop.f32.mrf.mxu0  ;;  %v1278_v24 = vpop.f32.mrf.mxu1 }
 0x117   : > { %v923_v25 = vmax.f32 %v891_v19, 0.0  ;;  %v939_v26 = vmax.f32 %v907_v20, 0.0  ;;  %v1231_v27 = vadd.f32 %v1230_v23, %v1229_v17  ;;  %v1279_v28 = vadd.f32 %v1278_v24, %v1277_v18 }
 0x118   : > { %v853_v29 = vmul.f32 %v1730_v55, %v726_v21  ;;  %v869_v30 = vmul.f32 %v1730_v55, %v790_v22  ;;  %v1232_v31 = vpop.f32.mrf.mxu0  ;;  %v1280_v32 = vpop.f32.mrf.mxu1 }
 0x119   : > { %956 = vst.msk [vmem:[%s1748_s15 + $0x8] sm:$0xff] %vm954_vm0, %v923_v25  ;;  %972 = vst.msk [vmem:[%s1748_s15 + $0x88] sm:$0xff] %vm954_vm0, %v939_v26  ;;  %v729_v33 = vadd.f32 %v1231_v27, %v1725_v50  ;;  %v793_v34 = vadd.f32 %v1279_v28, %v1725_v50 }
 0x11a   : > { %v892_v35 = vadd.f32 %v1737_v60, %v853_v29  ;;  %v908_v36 = vadd.f32 %v1737_v60, %v869_v30  ;;  %v1233_v37 = vpop.f32.mrf.mxu0  ;;  %v1281_v38 = vpop.f32.mrf.mxu1 }
 0x11b   : > { %v854_v39 = vmul.f32 %v1730_v55, %v729_v33  ;;  %v870_v40 = vmul.f32 %v1730_v55, %v793_v34  ;;  %v1234_v41 = vadd.f32 %v1233_v37, %v1232_v31  ;;  %v1282_v42 = vadd.f32 %v1281_v38, %v1280_v32 }
 0x11c   : > { %v924_v43 = vmax.f32 %v892_v35, 0.0  ;;  %v940_v44 = vmax.f32 %v908_v36, 0.0  ;;  %v1235_v45 = vpop.f32.mrf.mxu0  ;;  %v1283_v46 = vpop.f32.mrf.mxu1 }
 0x11d   : > { %v893_v47 = vadd.f32 %v1737_v60, %v854_v39  ;;  %v909_v48 = vadd.f32 %v1737_v60, %v870_v40  ;;  %v734_v49 = vadd.f32 %v1234_v41, %v1725_v50  ;;  %v798_v51 = vadd.f32 %v1282_v42, %v1725_v50 }
 0x11e   : > { %957 = vst.msk [vmem:[%s1748_s15 + $0x10] sm:$0xff] %vm954_vm0, %v924_v43  ;;  %973 = vst.msk [vmem:[%s1748_s15 + $0x90] sm:$0xff] %vm954_vm0, %v940_v44  ;;  %v1236_v52 = vpop.f32.mrf.mxu0  ;;  %v1284_v53 = vpop.f32.mrf.mxu1 }
 0x11f   : > { %v925_v54 = vmax.f32 %v893_v47, 0.0  ;;  %v941_v56 = vmax.f32 %v909_v48, 0.0  ;;  %v855_v57 = vmul.f32 %v1730_v55, %v734_v49  ;;  %v871_v58 = vmul.f32 %v1730_v55, %v798_v51 }
 0x120   : > { %v1237_v59 = vadd.f32 %v1236_v52, %v1235_v45  ;;  %v1285_v61 = vadd.f32 %v1284_v53, %v1283_v46  ;;  %v1238_v62 = vpop.f32.mrf.mxu0  ;;  %v1286_v63 = vpop.f32.mrf.mxu1 }
 0x121   : > { %958 = vst.msk [vmem:[%s1748_s15 + $0x18] sm:$0xff] %vm954_vm0, %v925_v54  ;;  %974 = vst.msk [vmem:[%s1748_s15 + $0x98] sm:$0xff] %vm954_vm0, %v941_v56  ;;  %v894_v0 = vadd.f32 %v1737_v60, %v855_v57  ;;  %v910_v1 = vadd.f32 %v1737_v60, %v871_v58 }
 0x122   : > { %v737_v2 = vadd.f32 %v1237_v59, %v1725_v50  ;;  %v801_v3 = vadd.f32 %v1285_v61, %v1725_v50  ;;  %v1239_v4 = vpop.f32.mrf.mxu0  ;;  %v1287_v5 = vpop.f32.mrf.mxu1 }
 0x123   : > { %v926_v6 = vmax.f32 %v894_v0, 0.0  ;;  %v942_v7 = vmax.f32 %v910_v1, 0.0  ;;  %v1240_v8 = vadd.f32 %v1239_v4, %v1238_v62  ;;  %v1288_v9 = vadd.f32 %v1287_v5, %v1286_v63 }
 0x124   : > { %v856_v10 = vmul.f32 %v1730_v55, %v737_v2  ;;  %v872_v11 = vmul.f32 %v1730_v55, %v801_v3  ;;  %v1241_v12 = vpop.f32.mrf.mxu0  ;;  %v1289_v13 = vpop.f32.mrf.mxu1 }
 0x125   : > { %959 = vst.msk [vmem:[%s1748_s15 + $0x20] sm:$0xff] %vm954_vm0, %v926_v6  ;;  %975 = vst.msk [vmem:[%s1748_s15 + $0xa0] sm:$0xff] %vm954_vm0, %v942_v7  ;;  %v742_v14 = vadd.f32 %v1240_v8, %v1725_v50  ;;  %v806_v15 = vadd.f32 %v1288_v9, %v1725_v50 }
 0x126   : > { %v895_v16 = vadd.f32 %v1737_v60, %v856_v10  ;;  %v911_v17 = vadd.f32 %v1737_v60, %v872_v11  ;;  %v1242_v18 = vpop.f32.mrf.mxu0  ;;  %v1290_v19 = vpop.f32.mrf.mxu1 }
 0x127   : > { %v857_v20 = vmul.f32 %v1730_v55, %v742_v14  ;;  %v873_v21 = vmul.f32 %v1730_v55, %v806_v15  ;;  %v1243_v22 = vadd.f32 %v1242_v18, %v1241_v12  ;;  %v1291_v23 = vadd.f32 %v1290_v19, %v1289_v13 }
 0x128   : > { %v927_v24 = vmax.f32 %v895_v16, 0.0  ;;  %v943_v25 = vmax.f32 %v911_v17, 0.0  ;;  %v1244_v26 = vpop.f32.mrf.mxu0  ;;  %v1292_v27 = vpop.f32.mrf.mxu1 }
 0x129   : > { %v896_v28 = vadd.f32 %v1737_v60, %v857_v20  ;;  %v912_v29 = vadd.f32 %v1737_v60, %v873_v21  ;;  %v745_v30 = vadd.f32 %v1243_v22, %v1725_v50  ;;  %v809_v31 = vadd.f32 %v1291_v23, %v1725_v50 }
 0x12a   : > { %960 = vst.msk [vmem:[%s1748_s15 + $0x28] sm:$0xff] %vm954_vm0, %v927_v24  ;;  %976 = vst.msk [vmem:[%s1748_s15 + $0xa8] sm:$0xff] %vm954_vm0, %v943_v25  ;;  %v1245_v32 = vpop.f32.mrf.mxu0  ;;  %v1293_v33 = vpop.f32.mrf.mxu1 }
 0x12b   : > { %v928_v34 = vmax.f32 %v896_v28, 0.0  ;;  %v944_v35 = vmax.f32 %v912_v29, 0.0  ;;  %v858_v36 = vmul.f32 %v1730_v55, %v745_v30  ;;  %v874_v37 = vmul.f32 %v1730_v55, %v809_v31 }
 0x12c   : > { %v1246_v38 = vadd.f32 %v1245_v32, %v1244_v26  ;;  %v1294_v39 = vadd.f32 %v1293_v33, %v1292_v27  ;;  %v1247_v40 = vpop.f32.mrf.mxu0  ;;  %v1295_v41 = vpop.f32.mrf.mxu1 }
 0x12d   : > { %961 = vst.msk [vmem:[%s1748_s15 + $0x30] sm:$0xff] %vm954_vm0, %v928_v34  ;;  %977 = vst.msk [vmem:[%s1748_s15 + $0xb0] sm:$0xff] %vm954_vm0, %v944_v35  ;;  %v897_v42 = vadd.f32 %v1737_v60, %v858_v36  ;;  %v913_v43 = vadd.f32 %v1737_v60, %v874_v37 }
 0x12e   : > { %v750_v44 = vadd.f32 %v1246_v38, %v1725_v50  ;;  %v814_v45 = vadd.f32 %v1294_v39, %v1725_v50  ;;  %v1248_v46 = vpop.f32.mrf.mxu0  ;;  %v1296_v47 = vpop.f32.mrf.mxu1 }
 0x12f   : > { %v929_v48 = vmax.f32 %v897_v42, 0.0  ;;  %v945_v49 = vmax.f32 %v913_v43, 0.0  ;;  %v1249_v51 = vadd.f32 %v1248_v46, %v1247_v40  ;;  %v1297_v52 = vadd.f32 %v1296_v47, %v1295_v41 }
 0x130   : > { %v859_v53 = vmul.f32 %v1730_v55, %v750_v44  ;;  %v875_v54 = vmul.f32 %v1730_v55, %v814_v45  ;;  %v1250_v56 = vpop.f32.mrf.mxu0  ;;  %v1298_v57 = vpop.f32.mrf.mxu1 }
 0x131   : > { %962 = vst.msk [vmem:[%s1748_s15 + $0x38] sm:$0xff] %vm954_vm0, %v929_v48  ;;  %978 = vst.msk [vmem:[%s1748_s15 + $0xb8] sm:$0xff] %vm954_vm0, %v945_v49  ;;  %v753_v58 = vadd.f32 %v1249_v51, %v1725_v50  ;;  %v817_v59 = vadd.f32 %v1297_v52, %v1725_v50 }
 0x132   : > { %v898_v61 = vadd.f32 %v1737_v60, %v859_v53  ;;  %v914_v62 = vadd.f32 %v1737_v60, %v875_v54  ;;  %v1251_v63 = vpop.f32.mrf.mxu0  ;;  %v1299_v0 = vpop.f32.mrf.mxu1 }
 0x133   : > { %v860_v1 = vmul.f32 %v1730_v55, %v753_v58  ;;  %v876_v2 = vmul.f32 %v1730_v55, %v817_v59  ;;  %v1252_v3 = vadd.f32 %v1251_v63, %v1250_v56  ;;  %v1300_v4 = vadd.f32 %v1299_v0, %v1298_v57 }
 0x134   : > { %v930_v5 = vmax.f32 %v898_v61, 0.0  ;;  %v946_v6 = vmax.f32 %v914_v62, 0.0  ;;  %v1253_v7 = vpop.f32.mrf.mxu0  ;;  %v1301_v8 = vpop.f32.mrf.mxu1 }
 0x135   : > { %v899_v9 = vadd.f32 %v1737_v60, %v860_v1  ;;  %v915_v10 = vadd.f32 %v1737_v60, %v876_v2  ;;  %v758_v11 = vadd.f32 %v1252_v3, %v1725_v50  ;;  %v822_v12 = vadd.f32 %v1300_v4, %v1725_v50 }
 0x136   : > { %963 = vst.msk [vmem:[%s1748_s15 + $0x40] sm:$0xff] %vm954_vm0, %v930_v5  ;;  %979 = vst.msk [vmem:[%s1748_s15 + $0xc0] sm:$0xff] %vm954_vm0, %v946_v6  ;;  %v1254_v13 = vpop.f32.mrf.mxu0  ;;  %v1302_v14 = vpop.f32.mrf.mxu1 }
 0x137   : > { %v931_v15 = vmax.f32 %v899_v9, 0.0  ;;  %v947_v16 = vmax.f32 %v915_v10, 0.0  ;;  %v861_v17 = vmul.f32 %v1730_v55, %v758_v11  ;;  %v877_v18 = vmul.f32 %v1730_v55, %v822_v12 }
 0x138   : > { %v1255_v19 = vadd.f32 %v1254_v13, %v1253_v7  ;;  %v1303_v20 = vadd.f32 %v1302_v14, %v1301_v8  ;;  %v1256_v21 = vpop.f32.mrf.mxu0  ;;  %v1304_v22 = vpop.f32.mrf.mxu1 }
 0x139   : > { %964 = vst.msk [vmem:[%s1748_s15 + $0x48] sm:$0xff] %vm954_vm0, %v931_v15  ;;  %980 = vst.msk [vmem:[%s1748_s15 + $0xc8] sm:$0xff] %vm954_vm0, %v947_v16  ;;  %v900_v23 = vadd.f32 %v1737_v60, %v861_v17  ;;  %v916_v24 = vadd.f32 %v1737_v60, %v877_v18 }
 0x13a   : > { %v761_v25 = vadd.f32 %v1255_v19, %v1725_v50  ;;  %v825_v26 = vadd.f32 %v1303_v20, %v1725_v50  ;;  %v1257_v27 = vpop.f32.mrf.mxu0  ;;  %v1305_v28 = vpop.f32.mrf.mxu1 }
 0x13b   : > { %v932_v29 = vmax.f32 %v900_v23, 0.0  ;;  %v948_v30 = vmax.f32 %v916_v24, 0.0  ;;  %v1258_v31 = vadd.f32 %v1257_v27, %v1256_v21  ;;  %v1306_v32 = vadd.f32 %v1305_v28, %v1304_v22 }
 0x13c   : > { %v862_v33 = vmul.f32 %v1730_v55, %v761_v25  ;;  %v878_v34 = vmul.f32 %v1730_v55, %v825_v26  ;;  %v1259_v35 = vpop.f32.mrf.mxu0  ;;  %v1307_v36 = vpop.f32.mrf.mxu1 }
 0x13d   : > { %965 = vst.msk [vmem:[%s1748_s15 + $0x50] sm:$0xff] %vm954_vm0, %v932_v29  ;;  %981 = vst.msk [vmem:[%s1748_s15 + $0xd0] sm:$0xff] %vm954_vm0, %v948_v30  ;;  %v766_v37 = vadd.f32 %v1258_v31, %v1725_v50  ;;  %v830_v38 = vadd.f32 %v1306_v32, %v1725_v50 }
 0x13e   : > { %v901_v39 = vadd.f32 %v1737_v60, %v862_v33  ;;  %v917_v40 = vadd.f32 %v1737_v60, %v878_v34  ;;  %v1260_v41 = vpop.f32.mrf.mxu0  ;;  %v1308_v42 = vpop.f32.mrf.mxu1 }
 0x13f   : > { %v863_v43 = vmul.f32 %v1730_v55, %v766_v37  ;;  %v879_v44 = vmul.f32 %v1730_v55, %v830_v38  ;;  %v1261_v45 = vadd.f32 %v1260_v41, %v1259_v35  ;;  %v1309_v46 = vadd.f32 %v1308_v42, %v1307_v36 }
 0x140   : > { %v933_v47 = vmax.f32 %v901_v39, 0.0  ;;  %v949_v48 = vmax.f32 %v917_v40, 0.0  ;;  %v1262_v49 = vpop.f32.mrf.mxu0  ;;  %v1310_v51 = vpop.f32.mrf.mxu1 }
 0x141   : > { %v902_v52 = vadd.f32 %v1737_v60, %v863_v43  ;;  %v918_v53 = vadd.f32 %v1737_v60, %v879_v44  ;;  %v769_v54 = vadd.f32 %v1261_v45, %v1725_v50  ;;  %v833_v56 = vadd.f32 %v1309_v46, %v1725_v50 }
 0x142   : > { %966 = vst.msk [vmem:[%s1748_s15 + $0x58] sm:$0xff] %vm954_vm0, %v933_v47  ;;  %982 = vst.msk [vmem:[%s1748_s15 + $0xd8] sm:$0xff] %vm954_vm0, %v949_v48  ;;  %v1263_v57 = vpop.f32.mrf.mxu0  ;;  %v1311_v58 = vpop.f32.mrf.mxu1 }
 0x143   : > { %v934_v59 = vmax.f32 %v902_v52, 0.0  ;;  %v950_v61 = vmax.f32 %v918_v53, 0.0  ;;  %v864_v62 = vmul.f32 %v1730_v55, %v769_v54  ;;  %v880_v63 = vmul.f32 %v1730_v55, %v833_v56 }
 0x144   : > { %v1264_v0 = vadd.f32 %v1263_v57, %v1262_v49  ;;  %v1312_v1 = vadd.f32 %v1311_v58, %v1310_v51  ;;  %v1265_v2 = vpop.f32.mrf.mxu0  ;;  %v1313_v3 = vpop.f32.mrf.mxu1 }
 0x145   : > { %967 = vst.msk [vmem:[%s1748_s15 + $0x60] sm:$0xff] %vm954_vm0, %v934_v59  ;;  %983 = vst.msk [vmem:[%s1748_s15 + $0xe0] sm:$0xff] %vm954_vm0, %v950_v61  ;;  %v903_v4 = vadd.f32 %v1737_v60, %v864_v62  ;;  %v919_v5 = vadd.f32 %v1737_v60, %v880_v63 }
 0x146   : > { %v774_v6 = vadd.f32 %v1264_v0, %v1725_v50  ;;  %v838_v7 = vadd.f32 %v1312_v1, %v1725_v50  ;;  %v1266_v8 = vpop.f32.mrf.mxu0  ;;  %v1314_v9 = vpop.f32.mrf.mxu1 }
 0x147   : > { %v935_v10 = vmax.f32 %v903_v4, 0.0  ;;  %v951_v11 = vmax.f32 %v919_v5, 0.0  ;;  %v1267_v12 = vadd.f32 %v1266_v8, %v1265_v2  ;;  %v1315_v13 = vadd.f32 %v1314_v9, %v1313_v3 }
 0x148   : > { %v865_v14 = vmul.f32 %v1730_v55, %v774_v6  ;;  %v881_v15 = vmul.f32 %v1730_v55, %v838_v7 }
 0x149   : > { %968 = vst.msk [vmem:[%s1748_s15 + $0x68] sm:$0xff] %vm954_vm0, %v935_v10  ;;  %984 = vst.msk [vmem:[%s1748_s15 + $0xe8] sm:$0xff] %vm954_vm0, %v951_v11  ;;  %v777_v16 = vadd.f32 %v1267_v12, %v1725_v50  ;;  %v841_v17 = vadd.f32 %v1315_v13, %v1725_v50 }
 0x14a   : > { %v904_v18 = vadd.f32 %v1737_v60, %v865_v14  ;;  %v920_v19 = vadd.f32 %v1737_v60, %v881_v15 }
 0x14b   : > { %v866_v20 = vmul.f32 %v1730_v55, %v777_v16  ;;  %v882_v21 = vmul.f32 %v1730_v55, %v841_v17 }
 0x14c   : > { %v936_v22 = vmax.f32 %v904_v18, 0.0  ;;  %v952_v23 = vmax.f32 %v920_v19, 0.0 }
 0x14d   : > { %v905_v24 = vadd.f32 %v1737_v60, %v866_v20  ;;  %v921_v25 = vadd.f32 %v1737_v60, %v882_v21 }
 0x14e   : > { %969 = vst.msk [vmem:[%s1748_s15 + $0x70] sm:$0xff] %vm954_vm0, %v936_v22  ;;  %985 = vst.msk [vmem:[%s1748_s15 + $0xf0] sm:$0xff] %vm954_vm0, %v952_v23 }
 0x14f   : > { %v937_v26 = vmax.f32 %v905_v24, 0.0  ;;  %v953_v50 = vmax.f32 %v921_v25, 0.0 }
 0x151   : > { %970 = vst.msk [vmem:[%s1748_s15 + $0x78] sm:$0xff] %vm954_vm0, %v937_v26  ;;  %986 = vst.msk [vmem:[%s1748_s15 + $0xf8] sm:$0xff] %vm954_vm0, %v953_v50 }
 0x152 PF: > { %s18_s23 = sadd.s32 1, %s1531_s23   ;;  %s1929_s18 = smov %s1515_s19 }
 0x153   : > { %p15_p8 = scmp.ge.s32.totalorder %s18_s23, 4   ;;  %s1930_s19 = smov %s1519_s20 }
 0x154   : > { %s1931_s20 = smov %s1615_s30  ;;  %s1932_s21 = smov %s1527_s22 }
 0x155   : > { %s1933_s22 = smov %s1935_s25  ;;  %17 = sbr.rel (!%p15_p8) target bundleno = 4 (0x4), region = 92 }
 0x15a   :  { %1015 = vsyncpa [#allocation3], 1 }
 0x15b   :  { %1017 = vsyncpa [#allocation3 + $0x1], 1 }

</bundles_post_ra>
